<compile_context>
chip_gen: v6e
topology: v6e:2x2x1
jax: 0.10.0
libtpu: 0.0.40
codegen_flags: <defaults>
</compile_context>

<pallas_src>
import functools

import jax
import jax.numpy as jnp
from jax import lax
from jax.experimental import pallas as pl
from jax.experimental.pallas import tpu as pltpu

_LANE = 128
_SUBLANE = 8


def _round_up(n, m):
    return ((n + m - 1) // m) * m


def _vmem_capacity_bytes():
    """Physical VMEM per core; conservative (v7x-sized) fallback if unknown."""
    try:
        return int(pltpu.get_tpu_info().vmem_capacity_bytes)
    except Exception:
        return 64 * 1024 * 1024


def prepare_params(weight, bias, *, use_bf16=False):
    """One-time parameter prep; call OUTSIDE the per-step path.

    Pads the class dim C up to a multiple of 128 so the kernel's output
    stores are lane-dense (unmasked vst) and optionally casts the weight to
    bf16 (f32 accumulation stays inside the kernel; bf16 is fine on v5e too).
    Weight layout stays (C, D): the kernel contracts over D, no transpose.
    """
    C, D = weight.shape
    assert bias.shape == (C,)
    C_pad = _round_up(C, _LANE)
    w_dtype = jnp.bfloat16 if use_bf16 else weight.dtype
    w_p = jnp.zeros((C_pad, D), w_dtype).at[:C, :].set(weight.astype(w_dtype))
    b_p = jnp.zeros((1, C_pad), jnp.float32).at[0, :C].set(
        bias.astype(jnp.float32))
    return w_p, b_p


def _linear_kernel(x_ref, w_ref, b_ref, o_ref, acc_ref):
    # x_ref: (TB, TK)  w_ref: (TC, TK)  b_ref: (1, TC)  o_ref: (TB, TC)
    # Contract over the shared feature axis (x @ W^T) on the MXU with f32
    # accumulation; bias add + store happen only on the last K step.
    k = pl.program_id(2)

    @pl.when(k == 0)
    def _init():
        acc_ref[...] = jnp.zeros_like(acc_ref)

    acc_ref[...] += lax.dot_general(
        x_ref[...],
        w_ref[...],
        dimension_numbers=(((1,), (1,)), ((), ())),
        preferred_element_type=jnp.float32,
    )

    @pl.when(k == pl.num_programs(2) - 1)
    def _finish():
        o_ref[...] = (acc_ref[...] + b_ref[...].astype(jnp.float32)).astype(
            o_ref.dtype)


def _block_spec(shape, index_map, single_buffer=False):
    if single_buffer:
        try:
            # Resident block (constant index_map): one buffer, half the VMEM.
            return pl.BlockSpec(shape, index_map, pipeline_mode=pl.Buffered(1))
        except (TypeError, ValueError):
            pass  # older Pallas without per-spec buffering: use the default
    return pl.BlockSpec(shape, index_map)


@functools.partial(jax.jit,
                   static_argnames=("num_classes", "block_b", "block_c"))
def logistic_regression_forward(x, w_p, b_p, *, num_classes,
                                block_b=None, block_c=None):
    """Logits = x @ W^T + b.

    x:   (B, D) activations (f32 or bf16; bf16 halves HBM traffic).
    w_p: (C_pad, D) padded weight from prepare_params.
    b_p: (1, C_pad) padded bias from prepare_params.
    Returns (B, num_classes) logits in x.dtype.
    """
    B, D = x.shape
    C_pad, Dw = w_p.shape
    assert D == Dw and b_p.shape == (1, C_pad)
    assert num_classes <= C_pad

    out_dtype = x.dtype
    compute_dtype = w_p.dtype
    x_c = x if x.dtype == compute_dtype else x.astype(compute_dtype)

    x_bytes = jnp.dtype(compute_dtype).itemsize
    w_bytes = jnp.dtype(w_p.dtype).itemsize
    out_bytes = jnp.dtype(out_dtype).itemsize

    # --- VMEM-driven tile plan (re-derived per chip generation). ------------
    vmem_cap = _vmem_capacity_bytes()
    budget = min(int(vmem_cap * 0.8), vmem_cap - (8 << 20))

    # Class tile: default = whole padded class dim (weight held resident).
    TC = C_pad if block_c is None else min(_round_up(block_c, _LANE), C_pad)

    # Feature (contraction) tile: keep the whole weight resident when it fits;
    # otherwise fall back to K-tiling with the f32 VMEM accumulator.
    if TC * D * w_bytes <= budget // 2:
        TK, D_pad = D, D
    else:
        TK = max(_LANE, ((budget // 4) // (TC * w_bytes)) // _LANE * _LANE)
        D_pad = _round_up(D, TK)
    n_k = D_pad // TK

    if D_pad != D:
        # K-tiling fallback (weight larger than VMEM): zero-pad the feature
        # dim so partial K blocks never mix garbage into the accumulator.
        # This is the only regime in which the wrapper touches x.
        x_c = jnp.zeros((B, D_pad), compute_dtype).at[:, :D].set(x_c)
        w_p = jnp.zeros((C_pad, D_pad), w_p.dtype).at[:, :D].set(w_p)

    # Batch tile cap: biggest multiple of 8 <= block_b (default 1024 rows).
    tb_cap = 1024 if block_b is None else block_b
    tb_cap = max(_SUBLANE,
                 _round_up(min(tb_cap, _round_up(B, _SUBLANE)), _SUBLANE))

    # v7x megacore: if the whole batch collapses into one tile, split the
    # class dim so both TensorCores get a parallel grid step.
    if (block_c is None and C_pad >= 2 * _LANE
            and _round_up(B, _SUBLANE) <= tb_cap):
        TC = _round_up(TC // 2, _LANE)

    n_c = pl.cdiv(C_pad, TC)
    resident_w = (n_c == 1 and n_k == 1)      # constant index_map -> 1 buffer
    w_bufs = 1 if resident_w else 2
    fixed_bytes = TC * TK * w_bytes * w_bufs + TC * 4 * 2     # weight + bias

    # Double-buffered x/out tiles + f32 accumulator must fit the remainder.
    per_row = 2 * TK * x_bytes + 2 * TC * out_bytes + TC * 4
    TB = (budget - fixed_bytes) // per_row
    TB = max(_SUBLANE, min(tb_cap, TB // _SUBLANE * _SUBLANE))
    n_b = pl.cdiv(B, TB)

    grid = (n_c, n_b, n_k)

    out = pl.pallas_call(
        _linear_kernel,
        out_shape=jax.ShapeDtypeStruct((B, C_pad), out_dtype),
        grid_spec=pltpu.PrefetchScalarGridSpec(
            num_scalar_prefetch=0,
            grid=grid,
            in_specs=[
                # x tile marches over the batch (and K in the fallback path).
                _block_spec((TB, TK), lambda c, b, k: (b, k)),
                # weight: resident across the inner batch loop.
                _block_spec((TC, TK), lambda c, b, k: (c, k),
                            single_buffer=resident_w),
                # bias: tiny, resident.
                _block_spec((1, TC), lambda c, b, k: (0, c),
                            single_buffer=(n_c == 1)),
            ],
            out_specs=pl.BlockSpec((TB, TC), lambda c, b, k: (b, c)),
            scratch_shapes=[pltpu.VMEM((TB, TC), jnp.float32)],
        ),
        compiler_params=pltpu.CompilerParams(
            dimension_semantics=("parallel", "parallel", "arbitrary"),
            vmem_limit_bytes=min(vmem_cap - (4 << 20), budget + (8 << 20)),
        ),
        cost_estimate=pl.CostEstimate(
            flops=2 * B * D_pad * C_pad,
            transcendentals=0,
            bytes_accessed=(B * D_pad * x_bytes          # x read once
                            + C_pad * D_pad * w_bytes     # resident weight
                            + C_pad * 4                   # bias
                            + B * C_pad * out_bytes),     # output write
        ),
    )(x_c, w_p, b_p)

    # Lane-dense padded writeback; slice only when C is not already aligned.
    return out if num_classes == C_pad else out[:, :num_classes]


if __name__ == "__main__":
    # Deterministic synthetic parameters / inputs (no checkpoint load).
    batch, input_size, num_classes = 8, 32, 4

    key = jax.random.PRNGKey(0)
    kx, kw, kb = jax.random.split(key, 3)

    x = jax.random.normal(kx, (batch, input_size), dtype=jnp.float32)
    # Mimic nn.Linear default init scale (uniform in [-1/sqrt(D), 1/sqrt(D)]).
    bound = 1.0 / (input_size ** 0.5)
    weight = jax.random.uniform(
        kw, (num_classes, input_size), dtype=jnp.float32,
        minval=-bound, maxval=bound)
    bias = jax.random.uniform(
        kb, (num_classes,), dtype=jnp.float32, minval=-bound, maxval=bound)

    # One-time parameter prep (pad C to 128, keep f32 for the 1e-5 check).
    w_p, b_p = prepare_params(weight, bias, use_bf16=False)

    out = logistic_regression_forward(x, w_p, b_p, num_classes=num_classes)
    out = jax.block_until_ready(out)

    # Correctness check against plain-JAX reference of the PyTorch semantics.
    ref = x @ weight.T + bias
    assert out.shape == (batch, num_classes)
    assert jnp.allclose(out, ref, atol=1e-5, rtol=1e-5)

    print("KERNEL_OK")
</pallas_src>

<mosaic_0001>
module attributes {stable_mosaic.version = 11 : i64} {
  func.func @_linear_kernel(%arg0: i32, %arg1: i32, %arg2: i32, %arg3: memref<8x32xf32, #tpu.memory_space<vmem>>, %arg4: memref<128x32xf32, #tpu.memory_space<vmem>>, %arg5: memref<1x128xf32, #tpu.memory_space<vmem>>, %arg6: memref<8x128xf32, #tpu.memory_space<vmem>>, %arg7: memref<8x128xf32, #tpu.memory_space<vmem>>) attributes {dimension_semantics = [#tpu.dimension_semantics<parallel>, #tpu.dimension_semantics<parallel>, #tpu.dimension_semantics<arbitrary>], iteration_bounds = array<i64: 1, 1, 1>, scalar_prefetch = 0 : i64, scratch_operands = 1 : i64, tpu.core_type = #tpu.core_type<tc>, window_params = [{transform_indices = @transform_0, window_bounds = array<i64: 8, 32>}, {pipeline_mode = #tpu.pipeline_mode<synchronous>, transform_indices = @transform_1, window_bounds = array<i64: 128, 32>}, {pipeline_mode = #tpu.pipeline_mode<synchronous>, transform_indices = @transform_2, window_bounds = array<i64: 1, 128>}, {transform_indices = @transform_3, window_bounds = array<i64: 8, 128>}]} {
    %c0_i32 = arith.constant 0 : i32
    %0 = arith.cmpi eq, %arg2, %c0_i32 : i32
    %1 = arith.extui %0 : i1 to i32
    %c0_i32_0 = arith.constant 0 : i32
    %2 = arith.cmpi ne, %1, %c0_i32_0 : i32
    scf.if %2 {
      %cst_10 = arith.constant 0.000000e+00 : f32
      %12 = vector.broadcast %cst_10 : f32 to vector<8x128xf32>
      %c0_11 = arith.constant 0 : index
      %c0_12 = arith.constant 0 : index
      %13 = vector.load %arg7[%c0_11, %c0_12] : memref<8x128xf32, #tpu.memory_space<vmem>>, vector<8x128xf32>
      tpu.vector_store %arg7[%c0_11, %c0_12], %12 {strides = array<i32>} : memref<8x128xf32, #tpu.memory_space<vmem>>, vector<8x128xf32>,
    } else {
    }
    %c0 = arith.constant 0 : index
    %c0_1 = arith.constant 0 : index
    %3 = vector.load %arg7[%c0, %c0_1] : memref<8x128xf32, #tpu.memory_space<vmem>>, vector<8x128xf32>
    %c0_2 = arith.constant 0 : index
    %c0_3 = arith.constant 0 : index
    %4 = vector.load %arg3[%c0_2, %c0_3] : memref<8x32xf32, #tpu.memory_space<vmem>>, vector<8x32xf32>
    %c0_4 = arith.constant 0 : index
    %c0_5 = arith.constant 0 : index
    %5 = vector.load %arg4[%c0_4, %c0_5] : memref<128x32xf32, #tpu.memory_space<vmem>>, vector<128x32xf32>
    %cst = arith.constant dense<0.000000e+00> : vector<8x128xf32>
    %6 = tpu.matmul %4, %5, %cst {dimension_numbers = #tpu.dot_dimension_numbers<[1], [1], [0], [0], [0, 0, 1, 0], [], []>} : vector<8x32xf32>, vector<128x32xf32>, vector<8x128xf32> -> vector<8x128xf32>
    %7 = arith.addf %3, %6 : vector<8x128xf32>
    %c0_6 = arith.constant 0 : index
    %c0_7 = arith.constant 0 : index
    %8 = vector.load %arg7[%c0_6, %c0_7] : memref<8x128xf32, #tpu.memory_space<vmem>>, vector<8x128xf32>
    tpu.vector_store %arg7[%c0_6, %c0_7], %7 {strides = array<i32>} : memref<8x128xf32, #tpu.memory_space<vmem>>, vector<8x128xf32>,
    %c0_i32_8 = arith.constant 0 : i32
    %9 = arith.cmpi eq, %arg2, %c0_i32_8 : i32
    %10 = arith.extui %9 : i1 to i32
    %c0_i32_9 = arith.constant 0 : i32
    %11 = arith.cmpi ne, %10, %c0_i32_9 : i32
    scf.if %11 {
      %c0_10 = arith.constant 0 : index
      %c0_11 = arith.constant 0 : index
      %12 = vector.load %arg7[%c0_10, %c0_11] : memref<8x128xf32, #tpu.memory_space<vmem>>, vector<8x128xf32>
      %c0_12 = arith.constant 0 : index
      %c0_13 = arith.constant 0 : index
      %13 = vector.load %arg5[%c0_12, %c0_13] : memref<1x128xf32, #tpu.memory_space<vmem>>, vector<1x128xf32>
      %14 = vector.broadcast %13 : vector<1x128xf32> to vector<8x128xf32>
      %15 = arith.addf %12, %14 : vector<8x128xf32>
      %c0_14 = arith.constant 0 : index
      %c0_15 = arith.constant 0 : index
      %16 = vector.load %arg6[%c0_14, %c0_15] : memref<8x128xf32, #tpu.memory_space<vmem>>, vector<8x128xf32>
      tpu.vector_store %arg6[%c0_14, %c0_15], %15 {strides = array<i32>} : memref<8x128xf32, #tpu.memory_space<vmem>>, vector<8x128xf32>,
    } else {
    }
    return
  }
  func.func @transform_0(%arg0: i32, %arg1: i32, %arg2: i32) -> (i32, i32) {
    %c0_i32 = arith.constant 0 : i32
    return %arg1, %arg2 : i32, i32
  }
  func.func @transform_1(%arg0: i32, %arg1: i32, %arg2: i32) -> (i32, i32) {
    %c0_i32 = arith.constant 0 : i32
    return %arg0, %arg2 : i32, i32
  }
  func.func @transform_2(%arg0: i32, %arg1: i32, %arg2: i32) -> (i32, i32) {
    %c0_i32 = arith.constant 0 : i32
    %c0_i32_0 = arith.constant 0 : i32
    return %c0_i32, %arg0 : i32, i32
  }
  func.func @transform_3(%arg0: i32, %arg1: i32, %arg2: i32) -> (i32, i32) {
    %c0_i32 = arith.constant 0 : i32
    return %arg1, %arg0 : i32, i32
  }
}

</mosaic_0001>

<bundles_post_ra>
// kernel: logistic_regression_forward.1
= control target key start
LH: loop header
LB: loop body
LE: loop exit
PB: predicated region body
PF: predicated region fallthrough
CT: control target
= control target key end

     0   :  { %vm37_vm0 = vcmask 261120   ;;  %v250_v0 = vmov 0.0   ;;  %vm251_vm1 = vmmov 0   ;;  %s346_s1 = inlined_call_operand.vmem [shape: f32[128,32], index: 1, kind: input, shape index: {}]   ;;  %s347_s0 = inlined_call_operand.vmem [shape: f32[8,32], index: 0, kind: input, shape index: {}]   ;;  %s348_s2 = inlined_call_operand.vmem [shape: f32[1,128], index: 2, kind: input, shape index: {}]   ;;  %s349_s3 = inlined_call_operand.vmem [shape: f32[8,128], index: 3, kind: output, shape index: {}]  }
   0x1   :  { %213 = vmatprep.subr.mxu0 %v250_v0  ;;  %v36_v1 = vld [vmem:[%s346_s1 + $0x78] sm:$0xff]  ;;  %245 = vmatprep.mubr.msk.f32.mxu0 %vm251_vm1, %v250_v0  ;;  %v35_v2 = vld [vmem:[%s346_s1 + $0x70] sm:$0xff]  ;;  %v34_v3 = vld [vmem:[%s346_s1 + $0x68] sm:$0xff] }
   0x2   :  { %214 = vmatpush3.xpose.msk.msra.mxu0 %vm37_vm0, %v36_v1  ;;  %v33_v4 = vld [vmem:[%s346_s1 + $0x60] sm:$0xff]  ;;  %v32_v5 = vld [vmem:[%s346_s1 + $0x58] sm:$0xff]  ;;  %v31_v6 = vld [vmem:[%s346_s1 + $0x50] sm:$0xff] }
   0x3   :  { %215 = vmatprep.subr.mxu0 %v250_v0  ;;  %v30_v7 = vld [vmem:[%s346_s1 + $0x48] sm:$0xff]  ;;  %v29_v8 = vld [vmem:[%s346_s1 + $0x40] sm:$0xff]  ;;  %v28_v9 = vld [vmem:[%s346_s1 + $0x38] sm:$0xff] }
   0x4   :  { %v27_v10 = vld [vmem:[%s346_s1 + $0x30] sm:$0xff]  ;;  %v26_v11 = vld [vmem:[%s346_s1 + $0x28] sm:$0xff]  ;;  %v25_v12 = vld [vmem:[%s346_s1 + $0x20] sm:$0xff] }
   0x5   :  { %v24_v13 = vld [vmem:[%s346_s1 + $0x18] sm:$0xff]  ;;  %v23_v14 = vld [vmem:[%s346_s1 + $0x10] sm:$0xff]  ;;  %v22_v15 = vld [vmem:[%s346_s1 + $0x8] sm:$0xff] }
   0x6   :  { %216 = vmatpush3.xpose.msk.msra.mxu0 %vm37_vm0, %v35_v2  ;;  %v21_v16 = vld [vmem:[%s346_s1] sm:$0xff] }
   0x7   :  { %217 = vmatprep.subr.mxu0 %v250_v0  ;;  %v20_v17 = vld [vmem:[%s347_s0] sm:$0xff] }
   0x8   :  { %v195_v18 = vld [vmem:[%s348_s2] ss:$0 sm:$0xff] }
   0xa   :  { %218 = vmatpush3.xpose.msk.msra.mxu0 %vm37_vm0, %v34_v3 }
   0xb   :  { %219 = vmatprep.subr.mxu0 %v250_v0 }
   0xe   :  { %220 = vmatpush3.xpose.msk.msra.mxu0 %vm37_vm0, %v33_v4 }
   0xf   :  { %221 = vmatprep.subr.mxu0 %v250_v0 }
  0x12   :  { %222 = vmatpush3.xpose.msk.msra.mxu0 %vm37_vm0, %v32_v5 }
  0x13   :  { %223 = vmatprep.subr.mxu0 %v250_v0 }
  0x16   :  { %224 = vmatpush3.xpose.msk.msra.mxu0 %vm37_vm0, %v31_v6 }
  0x17   :  { %225 = vmatprep.subr.mxu0 %v250_v0 }
  0x1a   :  { %226 = vmatpush3.xpose.msk.msra.mxu0 %vm37_vm0, %v30_v7 }
  0x1b   :  { %227 = vmatprep.subr.mxu0 %v250_v0 }
  0x1e   :  { %228 = vmatpush3.xpose.msk.msra.mxu0 %vm37_vm0, %v29_v8 }
  0x1f   :  { %229 = vmatprep.subr.mxu0 %v250_v0 }
  0x22   :  { %230 = vmatpush3.xpose.msk.msra.mxu0 %vm37_vm0, %v28_v9 }
  0x23   :  { %231 = vmatprep.subr.mxu0 %v250_v0 }
  0x26   :  { %232 = vmatpush3.xpose.msk.msra.mxu0 %vm37_vm0, %v27_v10 }
  0x27   :  { %233 = vmatprep.subr.mxu0 %v250_v0 }
  0x2a   :  { %234 = vmatpush3.xpose.msk.msra.mxu0 %vm37_vm0, %v26_v11 }
  0x2b   :  { %235 = vmatprep.subr.mxu0 %v250_v0 }
  0x2e   :  { %236 = vmatpush3.xpose.msk.msra.mxu0 %vm37_vm0, %v25_v12 }
  0x2f   :  { %237 = vmatprep.subr.mxu0 %v250_v0 }
  0x32   :  { %238 = vmatpush3.xpose.msk.msra.mxu0 %vm37_vm0, %v24_v13 }
  0x33   :  { %239 = vmatprep.subr.mxu0 %v250_v0 }
  0x36   :  { %240 = vmatpush3.xpose.msk.msra.mxu0 %vm37_vm0, %v23_v14 }
  0x37   :  { %241 = vmatprep.subr.mxu0 %v250_v0 }
  0x3a   :  { %242 = vmatpush3.xpose.msk.msra.mxu0 %vm37_vm0, %v22_v15 }
  0x3b   :  { %243 = vmatprep.subr.mxu0 %v250_v0 }
  0x3e   :  { %244 = vmatpush3.xpose.msk.msra.mxu0 %vm37_vm0, %v21_v16 }
  0x41   :  { %246 = vmatmul.mubr.msk.f32.vlgmr.msra.gmra.mxu0 %vm37_vm0, %v20_v17 }
 0x101   :  { %v155_v19 = vpop.f32.mrf.mxu0 }
 0x102   :  { %v172_v20 = vadd.f32 %v195_v18, %v155_v19 }
 0x103   :  { %v247_v21 = vpop.f32.mrf.mxu0 }
 0x104   :  { %173 = vst [vmem:[%s349_s3] sm:$0xff] %v172_v20 }

</bundles_post_ra>
